<compile_context>
chip_gen: v6e
topology: v6e:2x2x1
jax: 0.10.0
libtpu: 0.0.40
codegen_flags: <defaults>
</compile_context>

<pallas_src>
import jax
import jax.numpy as jnp
from jax import lax
from jax.experimental import pallas as pl
from jax.experimental.pallas import tpu as pltpu


# ----------------------------------------------------------------------------
# helpers
# ----------------------------------------------------------------------------
def _round_up(x, m):
    return ((x + m - 1) // m) * m


def _vmem_capacity_bytes():
    try:
        info = pltpu.get_tpu_info()
        return int(getattr(info, "vmem_capacity_bytes", 64 * 2**20))
    except Exception:
        return 64 * 2**20  # conservative (v7x-class) fallback


def _choose_tiling(S, mxu_itemsize, vmem_capacity_bytes):
    """Pick (tq, S_pad): q-tile rows and padded q extent."""
    # sublane packing granularity along the q axis for the MXU-feed dtype
    pack = max(8, 32 // max(int(mxu_itemsize), 1))
    # budget for the f32 (tq, S) score/prob temporaries:
    # ~8 MiB on 128 MiB-VMEM chips (v5e/v6e), ~4 MiB on 64 MiB chips (v7x).
    budget = 4 * 2**20 if vmem_capacity_bytes <= 64 * 2**20 else 8 * 2**20
    if S <= 128:
        tq = _round_up(S, pack)       # single full-extent q tile
        return tq, tq
    cap = budget // (4 * S)
    tq = min(512, max(128, (cap // 128) * 128))   # floor 128, multiple of 128
    tq = min(tq, _round_up(S, 128))
    return tq, _round_up(S, tq)


def _vmem_limit_bytes(capacity, per_step_bytes):
    if capacity >= 128 * 2**20:          # v5e / v6e (128 MiB physical)
        return 96 * 2**20
    # v7x-class (64 MiB physical): size from the actual working set + headroom
    hi = capacity - 12 * 2**20
    lo = min(32 * 2**20, hi)
    want = int(per_step_bytes * 1.5) + 4 * 2**20
    return max(lo, min(want, hi))


# ----------------------------------------------------------------------------
# kernel
# ----------------------------------------------------------------------------
def _make_sdpa_kernel(*, scale, has_bias, return_attn, compute_dtype):
    inv_scale = 1.0 / float(scale)

    def kernel(*refs):
        if has_bias:
            q_ref, k_ref, v_ref, bias_ref = refs[:4]
            out_refs = refs[4:]
        else:
            q_ref, k_ref, v_ref = refs[:3]
            bias_ref = None
            out_refs = refs[3:]
        out_ref = out_refs[0]
        attn_ref = out_refs[1] if return_attn else None

        q = q_ref[0, 0] * inv_scale          # (tq, D), scaled in native dtype
        k = k_ref[0, 0]                      # (S, D)
        v = v_ref[0, 0]                      # (S, D)
        if compute_dtype is not None and q.dtype != compute_dtype:
            # bf16 MXU feed (f32 operands cost ~3x the MXU passes); f32 accum.
            q = q.astype(compute_dtype)
            k = k.astype(compute_dtype)
            v = v.astype(compute_dtype)

        # scores: contract last dims of q and k -> no explicit k transpose.
        s = lax.dot_general(q, k, (((1,), (1,)), ((), ())),
                            preferred_element_type=jnp.float32)   # (tq, S) f32
        if bias_ref is not None:
            # bias block may have size-1 dims; jnp broadcasting handles it.
            s = s + bias_ref[0, 0].astype(jnp.float32)

        m = jnp.max(s, axis=-1, keepdims=True)
        e = jnp.exp(s - m)
        denom = jnp.sum(e, axis=-1, keepdims=True)
        # exact reciprocal (only tq divides): returned attn rows sum to 1.
        p = e * (1.0 / denom)

        out = jnp.dot(p.astype(v.dtype), v, preferred_element_type=jnp.float32)
        out_ref[0, 0] = out.astype(out_ref.dtype)
        if attn_ref is not None:
            attn_ref[0, 0] = p.astype(attn_ref.dtype)

    return kernel


# ----------------------------------------------------------------------------
# wrapper
# ----------------------------------------------------------------------------
def scaled_dot_product_attention(q, k, v, bias=None, *, scale, dropout=0.0,
                                 return_attn=True,
                                 attn_dtype=jnp.bfloat16,
                                 compute_dtype=jnp.bfloat16):
    """Pallas TPU ScaledDotProductAttention forward.

    q, k, v: [B, H, S, D]; bias: None or broadcastable to [B, H, S, S].
    Returns (output [B, H, S, D] in q.dtype, attn [B, H, S, S] in attn_dtype).

    attn_dtype=None / compute_dtype=None recover the module's exact dtypes
    (attn in q.dtype, full-precision MXU feed). The bf16 defaults halve the
    dominant S^2 HBM streams and are the recommended TPU configuration.
    return_attn=False skips the S^2 writeback entirely (returns (out, None)).
    """
    assert dropout == 0.0, "only p=0 (identity) dropout implemented"
    q = jnp.asarray(q)
    k = jnp.asarray(k)
    v = jnp.asarray(v)
    B, H, S, D = q.shape
    assert k.shape == (B, H, S, D) and v.shape == (B, H, S, D)

    out_dtype = q.dtype
    attn_dt = jnp.dtype(out_dtype if attn_dtype is None else attn_dtype)
    cdt = None if compute_dtype is None else jnp.dtype(compute_dtype)
    if cdt is not None and cdt == jnp.dtype(q.dtype):
        cdt = None                               # nothing to cast

    vmem_cap = _vmem_capacity_bytes()
    mxu_itemsize = (jnp.dtype(q.dtype) if cdt is None else cdt).itemsize
    tq, S_pad = _choose_tiling(S, mxu_itemsize, vmem_cap)
    n_q = S_pad // tq

    # ragged S: pad the q axis only (K axis stays un-tiled), slice outputs back
    if S_pad != S:
        q = jnp.pad(q, ((0, 0), (0, 0), (0, S_pad - S), (0, 0)))

    # --- bias: keep broadcast dims size-1 / un-materialized -----------------
    has_bias = bias is not None
    Bb = Hb = Sqb = Skb = 0
    if has_bias:
        bias = jnp.asarray(bias)
        assert bias.ndim <= 4, f"bias rank {bias.ndim} > 4"
        bias = bias.reshape((1,) * (4 - bias.ndim) + bias.shape)
        Bb, Hb, Sqb, Skb = bias.shape
        assert Bb in (1, B) and Hb in (1, H) and Sqb in (1, S) and Skb in (1, S), (
            f"bias shape {bias.shape} not broadcastable to {(B, H, S, S)}")
        if Sqb == S and S_pad != S:
            bias = jnp.pad(bias, ((0, 0), (0, 0), (0, S_pad - S), (0, 0)))

    # reorder grid so the broadcast batch axis is innermost -> Pallas elides
    # the repeated bias DMA; only when the bias savings beat the K/V refetch.
    reorder = bool(has_bias and Bb == 1 and B > 1 and Skb == S and tq >= 4 * D)

    # halve the bias HBM stream when it is re-read along broadcast B/H axes
    if (has_bias and cdt is not None and bias.dtype == jnp.float32
            and (Bb < B or Hb < H)):
        bias = bias.astype(jnp.bfloat16)

    if reorder:
        grid = (H, n_q, B)
        unpack = lambda h, qi, b: (b, h, qi)
        dim_sem = ("parallel", "arbitrary", "arbitrary")
    else:
        grid = (B, H, n_q)
        unpack = lambda b, h, qi: (b, h, qi)
        # prefer splitting megacore work across B/H (keeps per-core K/V reuse)
        dim_sem = ("parallel", "parallel",
                   "arbitrary" if B * H > 1 else "parallel")

    def _mk(index_map):
        return lambda *g: index_map(*unpack(*g))

    q_spec = pl.BlockSpec((1, 1, tq, D), _mk(lambda b, h, qi: (b, h, qi, 0)))
    out_spec = pl.BlockSpec((1, 1, tq, D), _mk(lambda b, h, qi: (b, h, qi, 0)))
    attn_spec = pl.BlockSpec((1, 1, tq, S), _mk(lambda b, h, qi: (b, h, qi, 0)))

    isz_q = jnp.dtype(q.dtype).itemsize
    isz_kv = jnp.dtype(k.dtype).itemsize
    kv_block = (1, 1, S, D)
    kv_map = _mk(lambda b, h, qi: (b, h, 0, 0))
    kv_kwargs = {}
    kv_nbuf = 2
    if vmem_cap <= 64 * 2**20 and 4 * S * D * isz_kv > 8 * 2**20:
        # K/V block index is constant across the inner q-tile axis; the 2nd
        # buffer only helps at (b,h) transitions but costs 2*S*D*isz each.
        kv_kwargs = {"pipeline_mode": pl.Buffered(1)}
        kv_nbuf = 1
    try:
        k_spec = pl.BlockSpec(kv_block, kv_map, **kv_kwargs)
    except TypeError:           # older jax without pipeline_mode
        kv_kwargs, kv_nbuf = {}, 2
        k_spec = pl.BlockSpec(kv_block, kv_map)
    v_spec = pl.BlockSpec(kv_block, kv_map, **kv_kwargs)

    in_specs = [q_spec, k_spec, v_spec]
    operands = [q, k, v]

    bias_bytes = 0
    if has_bias:
        bias_block = (1, 1, 1 if Sqb == 1 else tq, 1 if Skb == 1 else S)
        bias_spec = pl.BlockSpec(
            bias_block,
            _mk(lambda b, h, qi: (0 if Bb == 1 else b,
                                  0 if Hb == 1 else h,
                                  0 if Sqb == 1 else qi,
                                  0)))
        in_specs.append(bias_spec)
        operands.append(bias)
        bias_bytes = int(bias.size) * jnp.dtype(bias.dtype).itemsize

    if return_attn:
        out_shape = (jax.ShapeDtypeStruct((B, H, S_pad, D), out_dtype),
                     jax.ShapeDtypeStruct((B, H, S_pad, S), attn_dt))
        out_specs = [out_spec, attn_spec]
    else:
        out_shape = jax.ShapeDtypeStruct((B, H, S_pad, D), out_dtype)
        out_specs = out_spec

    # per-step VMEM working set (double-buffered blocks + f32 temporaries)
    per_step = (4 * tq * D * isz_q
                + kv_nbuf * 2 * S * D * isz_kv
                + 4 * tq * S * 4)
    if return_attn:
        per_step += 2 * tq * S * attn_dt.itemsize
    if has_bias:
        per_step += 2 * bias_block[2] * bias_block[3] * jnp.dtype(bias.dtype).itemsize
    vmem_limit = _vmem_limit_bytes(vmem_cap, per_step)

    flops = 4 * B * H * S_pad * S * D
    transcendentals = B * H * S_pad * S
    bytes_accessed = (2 * B * H * S_pad * D * isz_q        # q read + out write
                      + 2 * B * H * S * D * isz_kv         # k, v reads
                      + (B * H * S_pad * S * attn_dt.itemsize if return_attn else 0)
                      + bias_bytes)

    kernel = _make_sdpa_kernel(scale=float(scale), has_bias=has_bias,
                               return_attn=return_attn, compute_dtype=cdt)

    result = pl.pallas_call(
        kernel,
        out_shape=out_shape,
        grid_spec=pltpu.PrefetchScalarGridSpec(
            num_scalar_prefetch=0,
            grid=grid,
            in_specs=in_specs,
            out_specs=out_specs,
        ),
        compiler_params=pltpu.CompilerParams(
            dimension_semantics=dim_sem,
            vmem_limit_bytes=int(vmem_limit),
        ),
        cost_estimate=pl.CostEstimate(
            flops=int(flops),
            transcendentals=int(transcendentals),
            bytes_accessed=int(bytes_accessed),
        ),
    )(*operands)

    if return_attn:
        out, attn = result
    else:
        out, attn = result, None
    if S_pad != S:
        out = out[:, :, :S]
        if attn is not None:
            attn = attn[:, :, :S]
    return out, attn


# ----------------------------------------------------------------------------
# reference + self-test
# ----------------------------------------------------------------------------
def _reference(q, k, v, bias, scale):
    attn = jnp.einsum("bhsd,bhtd->bhst", q / scale, k)
    if bias is not None:
        attn = attn + bias
    attn = jax.nn.softmax(attn, axis=-1)
    out = jnp.einsum("bhst,bhtd->bhsd", attn, v)
    return out, attn


if __name__ == "__main__":
    key = jax.random.PRNGKey(0)
    kq, kk, kv_, kb = jax.random.split(key, 4)

    B, H, S, D = 2, 4, 8, 32
    scale = float(D) ** 0.5
    q = jax.random.normal(kq, (B, H, S, D), dtype=jnp.float32)
    k = jax.random.normal(kk, (B, H, S, D), dtype=jnp.float32)
    v = jax.random.normal(kv_, (B, H, S, D), dtype=jnp.float32)
    bias_full = 0.1 * jax.random.normal(kb, (B, H, S, S), dtype=jnp.float32)

    tol_f32 = dict(atol=2e-3, rtol=2e-3)
    tol_bf16 = dict(atol=3e-2, rtol=3e-2)

    # 1) full-precision mode (closest to torch numerics)
    out, attn = scaled_dot_product_attention(
        q, k, v, bias_full, scale=scale, dropout=0.0,
        attn_dtype=jnp.float32, compute_dtype=None)
    jax.block_until_ready((out, attn))
    r_out, r_attn = _reference(q, k, v, bias_full, scale)
    assert jnp.allclose(out, r_out, **tol_f32), "out mismatch (f32 mode)"
    assert jnp.allclose(attn, r_attn, **tol_f32), "attn mismatch (f32 mode)"

    # 2) default fast mode: bf16 MXU feed + bf16 attn writeback
    out, attn = scaled_dot_product_attention(q, k, v, bias_full, scale=scale)
    jax.block_until_ready((out, attn))
    assert jnp.allclose(out, r_out, **tol_bf16), "out mismatch (bf16 mode)"
    assert jnp.allclose(attn, r_attn, **tol_bf16), "attn mismatch (bf16 mode)"

    # 3) batch-broadcast pair bias [1,H,S,S] (un-materialized along batch)
    bias_b = bias_full[:1]
    out, attn = scaled_dot_product_attention(q, k, v, bias_b, scale=scale)
    jax.block_until_ready((out, attn))
    r_out_b, r_attn_b = _reference(q, k, v, bias_b, scale)
    assert jnp.allclose(out, r_out_b, **tol_bf16), "out mismatch (bcast bias)"
    assert jnp.allclose(attn, r_attn_b, **tol_bf16), "attn mismatch (bcast bias)"

    # 4) mask-style bias [B,1,1,S]: size-1 dims kept, no broadcast_to
    row_mask = jnp.where(jnp.arange(S) >= S - 2, -1e9, 0.0).astype(jnp.float32)
    bias_mask = jnp.broadcast_to(row_mask, (B, 1, 1, S))
    out, attn = scaled_dot_product_attention(q, k, v, bias_mask, scale=scale)
    jax.block_until_ready((out, attn))
    r_out_m, r_attn_m = _reference(q, k, v, bias_mask, scale)
    assert jnp.allclose(out, r_out_m, **tol_bf16), "out mismatch (mask bias)"
    assert jnp.allclose(attn, r_attn_m, **tol_bf16), "attn mismatch (mask bias)"

    # 5) no bias, attn-free variant (skips the S^2 writeback entirely)
    out, attn_none = scaled_dot_product_attention(q, k, v, None, scale=scale,
                                                  return_attn=False)
    jax.block_until_ready(out)
    r_out_n, _ = _reference(q, k, v, None, scale)
    assert attn_none is None
    assert jnp.allclose(out, r_out_n, **tol_bf16), "out mismatch (no bias)"

    # 6) ragged S + batch-broadcast bias: exercises q-axis padding and the
    #    bias-innermost grid reorder (tq >= 4*D)
    B2, H2, S2, D2 = 2, 2, 200, 16
    scale2 = float(D2) ** 0.5
    kq2, kk2, kv2, kb2 = jax.random.split(jax.random.PRNGKey(1), 4)
    q2 = jax.random.normal(kq2, (B2, H2, S2, D2), dtype=jnp.float32)
    k2 = jax.random.normal(kk2, (B2, H2, S2, D2), dtype=jnp.float32)
    v2 = jax.random.normal(kv2, (B2, H2, S2, D2), dtype=jnp.float32)
    b2 = 0.1 * jax.random.normal(kb2, (1, H2, S2, S2), dtype=jnp.float32)
    out2, attn2 = scaled_dot_product_attention(q2, k2, v2, b2, scale=scale2)
    jax.block_until_ready((out2, attn2))
    r_out2, r_attn2 = _reference(q2, k2, v2, b2, scale2)
    assert out2.shape == (B2, H2, S2, D2) and attn2.shape == (B2, H2, S2, S2)
    assert jnp.allclose(out2, r_out2, **tol_bf16), "out mismatch (ragged S)"
    assert jnp.allclose(attn2, r_attn2, **tol_bf16), "attn mismatch (ragged S)"

    print("KERNEL_OK")
</pallas_src>

<mosaic_0001>
module attributes {stable_mosaic.version = 11 : i64} {
  func.func @kernel(%arg0: i32, %arg1: i32, %arg2: i32, %arg3: memref<1x1x8x32xf32, #tpu.memory_space<vmem>>, %arg4: memref<1x1x8x32xf32, #tpu.memory_space<vmem>>, %arg5: memref<1x1x8x32xf32, #tpu.memory_space<vmem>>, %arg6: memref<1x1x8x8xf32, #tpu.memory_space<vmem>>, %arg7: memref<1x1x8x32xf32, #tpu.memory_space<vmem>>, %arg8: memref<1x1x8x8xf32, #tpu.memory_space<vmem>>) attributes {dimension_semantics = [#tpu.dimension_semantics<parallel>, #tpu.dimension_semantics<parallel>, #tpu.dimension_semantics<arbitrary>], iteration_bounds = array<i64: 2, 4, 1>, scalar_prefetch = 0 : i64, scratch_operands = 0 : i64, tpu.core_type = #tpu.core_type<tc>, window_params = [{transform_indices = @transform_0, window_bounds = array<i64: 1, 1, 8, 32>}, {transform_indices = @transform_1, window_bounds = array<i64: 1, 1, 8, 32>}, {transform_indices = @transform_2, window_bounds = array<i64: 1, 1, 8, 32>}, {transform_indices = @transform_3, window_bounds = array<i64: 1, 1, 8, 8>}, {transform_indices = @transform_4, window_bounds = array<i64: 1, 1, 8, 32>}, {transform_indices = @transform_5, window_bounds = array<i64: 1, 1, 8, 8>}]} {
    %c0 = arith.constant 0 : index
    %c0_0 = arith.constant 0 : index
    %c0_1 = arith.constant 0 : index
    %c0_2 = arith.constant 0 : index
    %0 = vector.load %arg3[%c0, %c0_0, %c0_1, %c0_2] : memref<1x1x8x32xf32, #tpu.memory_space<vmem>>, vector<1x1x8x32xf32>
    %1 = vector.shape_cast %0 : vector<1x1x8x32xf32> to vector<8x32xf32>
    %cst = arith.constant 0.176776692 : f32
    %2 = vector.broadcast %cst : f32 to vector<8x32xf32>
    %3 = arith.mulf %1, %2 : vector<8x32xf32>
    %c0_3 = arith.constant 0 : index
    %c0_4 = arith.constant 0 : index
    %c0_5 = arith.constant 0 : index
    %c0_6 = arith.constant 0 : index
    %4 = vector.load %arg4[%c0_3, %c0_4, %c0_5, %c0_6] : memref<1x1x8x32xf32, #tpu.memory_space<vmem>>, vector<1x1x8x32xf32>
    %5 = vector.shape_cast %4 : vector<1x1x8x32xf32> to vector<8x32xf32>
    %c0_7 = arith.constant 0 : index
    %c0_8 = arith.constant 0 : index
    %c0_9 = arith.constant 0 : index
    %c0_10 = arith.constant 0 : index
    %6 = vector.load %arg5[%c0_7, %c0_8, %c0_9, %c0_10] : memref<1x1x8x32xf32, #tpu.memory_space<vmem>>, vector<1x1x8x32xf32>
    %7 = vector.shape_cast %6 : vector<1x1x8x32xf32> to vector<8x32xf32>
    %cst_11 = arith.constant dense<0.000000e+00> : vector<8x8xf32>
    %8 = tpu.matmul %3, %5, %cst_11 {dimension_numbers = #tpu.dot_dimension_numbers<[1], [1], [0], [0], [0, 0, 1, 0], [], []>} : vector<8x32xf32>, vector<8x32xf32>, vector<8x8xf32> -> vector<8x8xf32>
    %c0_12 = arith.constant 0 : index
    %c0_13 = arith.constant 0 : index
    %c0_14 = arith.constant 0 : index
    %c0_15 = arith.constant 0 : index
    %9 = vector.load %arg6[%c0_12, %c0_13, %c0_14, %c0_15] : memref<1x1x8x8xf32, #tpu.memory_space<vmem>>, vector<1x1x8x8xf32>
    %10 = vector.shape_cast %9 : vector<1x1x8x8xf32> to vector<8x8xf32>
    %11 = arith.addf %8, %10 : vector<8x8xf32>
    %cst_16 = arith.constant dense<0xFF800000> : vector<8xf32>
    %12 = vector.multi_reduction <maximumf>, %11, %cst_16 [1] : vector<8x8xf32> to vector<8xf32>
    %13 = vector.shape_cast %12 : vector<8xf32> to vector<8x1xf32>
    %14 = vector.broadcast %13 : vector<8x1xf32> to vector<8x8xf32>
    %15 = arith.subf %11, %14 : vector<8x8xf32>
    %16 = math.exp %15 : vector<8x8xf32>
    %cst_17 = arith.constant dense<0.000000e+00> : vector<8xf32>
    %17 = vector.multi_reduction <add>, %16, %cst_17 [1] : vector<8x8xf32> to vector<8xf32>
    %18 = vector.shape_cast %17 : vector<8xf32> to vector<8x1xf32>
    %cst_18 = arith.constant 1.000000e+00 : f32
    %19 = vector.broadcast %cst_18 : f32 to vector<8x1xf32>
    %20 = arith.divf %19, %18 : vector<8x1xf32>
    %21 = vector.broadcast %20 : vector<8x1xf32> to vector<8x8xf32>
    %22 = arith.mulf %16, %21 : vector<8x8xf32>
    %cst_19 = arith.constant dense<0.000000e+00> : vector<8x32xf32>
    %23 = tpu.matmul %22, %7, %cst_19 {dimension_numbers = #tpu.dot_dimension_numbers<[1], [0], [0], [1], [0, 0, 1, 1], [], []>} : vector<8x8xf32>, vector<8x32xf32>, vector<8x32xf32> -> vector<8x32xf32>
    %c0_20 = arith.constant 0 : index
    %c0_21 = arith.constant 0 : index
    %c0_22 = arith.constant 0 : index
    %c0_23 = arith.constant 0 : index
    %24 = vector.load %arg7[%c0_20, %c0_21, %c0_22, %c0_23] : memref<1x1x8x32xf32, #tpu.memory_space<vmem>>, vector<1x1x8x32xf32>
    %25 = vector.shape_cast %24 : vector<1x1x8x32xf32> to vector<8x32xf32>
    %26 = vector.shape_cast %23 : vector<8x32xf32> to vector<1x1x8x32xf32>
    tpu.vector_store %arg7[%c0_20, %c0_21, %c0_22, %c0_23], %26 {strides = array<i32>} : memref<1x1x8x32xf32, #tpu.memory_space<vmem>>, vector<1x1x8x32xf32>,
    %c0_24 = arith.constant 0 : index
    %c0_25 = arith.constant 0 : index
    %c0_26 = arith.constant 0 : index
    %c0_27 = arith.constant 0 : index
    %27 = vector.load %arg8[%c0_24, %c0_25, %c0_26, %c0_27] : memref<1x1x8x8xf32, #tpu.memory_space<vmem>>, vector<1x1x8x8xf32>
    %28 = vector.shape_cast %27 : vector<1x1x8x8xf32> to vector<8x8xf32>
    %29 = vector.shape_cast %22 : vector<8x8xf32> to vector<1x1x8x8xf32>
    tpu.vector_store %arg8[%c0_24, %c0_25, %c0_26, %c0_27], %29 {strides = array<i32>} : memref<1x1x8x8xf32, #tpu.memory_space<vmem>>, vector<1x1x8x8xf32>,
    return
  }
  func.func @transform_0(%arg0: i32, %arg1: i32, %arg2: i32) -> (i32, i32, i32, i32) {
    %c0_i32 = arith.constant 0 : i32
    %c0_i32_0 = arith.constant 0 : i32
    return %arg0, %arg1, %arg2, %c0_i32 : i32, i32, i32, i32
  }
  func.func @transform_1(%arg0: i32, %arg1: i32, %arg2: i32) -> (i32, i32, i32, i32) {
    %c0_i32 = arith.constant 0 : i32
    %c0_i32_0 = arith.constant 0 : i32
    %c0_i32_1 = arith.constant 0 : i32
    return %arg0, %arg1, %c0_i32, %c0_i32_0 : i32, i32, i32, i32
  }
  func.func @transform_2(%arg0: i32, %arg1: i32, %arg2: i32) -> (i32, i32, i32, i32) {
    %c0_i32 = arith.constant 0 : i32
    %c0_i32_0 = arith.constant 0 : i32
    %c0_i32_1 = arith.constant 0 : i32
    return %arg0, %arg1, %c0_i32, %c0_i32_0 : i32, i32, i32, i32
  }
  func.func @transform_3(%arg0: i32, %arg1: i32, %arg2: i32) -> (i32, i32, i32, i32) {
    %c0_i32 = arith.constant 0 : i32
    %c0_i32_0 = arith.constant 0 : i32
    return %arg0, %arg1, %arg2, %c0_i32 : i32, i32, i32, i32
  }
  func.func @transform_4(%arg0: i32, %arg1: i32, %arg2: i32) -> (i32, i32, i32, i32) {
    %c0_i32 = arith.constant 0 : i32
    %c0_i32_0 = arith.constant 0 : i32
    return %arg0, %arg1, %arg2, %c0_i32 : i32, i32, i32, i32
  }
  func.func @transform_5(%arg0: i32, %arg1: i32, %arg2: i32) -> (i32, i32, i32, i32) {
    %c0_i32 = arith.constant 0 : i32
    %c0_i32_0 = arith.constant 0 : i32
    return %arg0, %arg1, %arg2, %c0_i32 : i32, i32, i32, i32
  }
}

</mosaic_0001>

<bundles_post_ra>
// kernel: tpu_custom_call.1
= control target key start
LH: loop header
LB: loop body
LE: loop exit
PB: predicated region body
PF: predicated region fallthrough
CT: control target
= control target key end

     0   :  { %s1534_s0 = inlined_call_operand.hbm [shape: f32[2,4,8,32], index: 0, kind: input, shape index: {}]   ;;  %s1535_s1 = inlined_call_operand.hbm [shape: f32[2,4,8,32], index: 1, kind: input, shape index: {}]   ;;  %s1536_s2 = inlined_call_operand.hbm [shape: f32[2,4,8,32], index: 2, kind: input, shape index: {}]   ;;  %s1537_s3 = inlined_call_operand.hbm [shape: f32[2,4,8,8], index: 3, kind: input, shape index: {}]   ;;  %s1538_s4 = inlined_call_operand.hbm [shape: f32[2,4,8,32], index: 4, kind: output, shape index: {0}]   ;;  %s1539_s5 = inlined_call_operand.hbm [shape: f32[2,4,8,8], index: 5, kind: output, shape index: {1}]  }
   0x1   :  { %1547 = sst [smem:[#allocation26_spill]] %s1535_s1 }
   0x2   :  { %11 = vsyncpa [#allocation3], 0 }
   0x3   :  { %13 = vsyncpa [#allocation3 + $0x1], 0 }
   0x4   :  { %14 = vsyncpa [#allocation6], 0 }
   0x5   :  { %16 = vsyncpa [#allocation6 + $0x1], 0 }
   0x6   :  { %17 = vsyncpa [#allocation9], 0 }
   0x7   :  { %19 = vsyncpa [#allocation9 + $0x1], 0 }
   0x8   :  { %20 = vsyncpa [#allocation4], 0 }
   0x9   :  { %22 = vsyncpa [#allocation4 + $0x1], 0 }
   0xa   :  { %23 = vsyncpa [#allocation12], 0 }
   0xb   :  { %25 = vsyncpa [#allocation12 + $0x1], 0  ;;  %s1252_s18 = smov 0   ;;  %s1254_s19 = smov 0  }
   0xc   :  { %s1256_s20 = smov 0   ;;  %s1258_s21 = smov 0  }
   0xd   :  { %s1260_s22 = smov 0   ;;  %s1262_s23 = smov 0  }
   0xe   :  { %s1264_s24 = smov 0   ;;  %s1266_s25 = smov 0  }
   0xf LB: > { %1548 = sst [smem:[#allocation18_spill]] %s1184_s18  ;;  %s1293_s26 = sadd.s32 4294967295, %s1212_s25   ;;  %s1212_s25 = sphi %s1266_s25, %s31_s25   ;;  %s1208_s24 = sphi %s1264_s24, %s1570_s24   ;;  %s1204_s23 = sphi %s1262_s23, %s1569_s23   ;;  %s1200_s22 = sphi %s1260_s22, %s1568_s22   ;;  %s1196_s21 = sphi %s1258_s21, %s1567_s21   ;;  %s1192_s20 = sphi %s1256_s20, %s1566_s20   ;;  %s1188_s19 = sphi %s1254_s19, %s1572_s19   ;;  %s1184_s18 = sphi %s1252_s18, %s1571_s18  }
  0x10   : > { %1549 = sst [smem:[#allocation19_spill]] %s1192_s20  ;;  %s815_s27 = sadd.s32 4294967294, %s1212_s25  }
  0x11   : > { %1550 = sst [smem:[#allocation20_spill]] %s1204_s23  ;;  %s46_s28 = sadd.s32 1, %s1204_s23 }
  0x12   : > { %1551 = sst [smem:[#allocation21_spill]] %s1208_s24  ;;  %s50_s29 = sadd.s32 1, %s1208_s24 }
  0x13   : > { %p48_p0 = scmp.ge.s32.totalorder %s46_s28, 4  ;;  %s61_s30 = sadd.s32 1, %s1192_s20 }
  0x14   : > { %p68_p1 = scmp.ne.s32.totalorder %s1192_s20, %s1188_s19  ;;  %p69_p2 = scmp.eq.s32.totalorder %s1212_s25, 0 }
  0x15   : > { %s1574_s28 = smov (%p48_p0, %s46_s28), 0  ;;  %s1576_s29 = smov (!%p48_p0, %s50_s29), %s1208_s24 }
  0x16   : > { %1552 = sst [smem:[#allocation22_spill]] %s1574_s28  ;;  %s55_s6 = ssub.s32 %s1204_s23, %s1574_s28 }
  0x17   : > { %p1307_p3 = por %p69_p2, %p68_p1  ;;  %p52_p4 = scmp.ge.s32.totalorder %s1576_s29, 2 }
  0x18   : > { %p74_p5 = scmp.ne.s32.totalorder %s1188_s19, %s1184_s18  ;;  %p75_p6 = scmp.eq.s32.totalorder %s1293_s26, 0 }
  0x19   : > { %p188_p7 = scmp.eq.s32.totalorder %s1293_s26, 7  ;;  %s1578_s29 = smov (%p52_p4, %s1576_s29), 0 }
  0x1a   : > { %1554 = sst [smem:[#allocation23_spill]] %s1578_s29  ;;  %p1317_p8 = por %p75_p6, %p74_p5 }
  0x1b   : > { %p1321_p9 = por %p188_p7, %p68_p1  ;;  %s54_s10 = ssub.s32 %s1208_s24, %s1578_s29 }
  0x1c   : > { %p194_p10 = scmp.eq.s32.totalorder %s815_s27, 7  ;;  %s56_s11 = sor.u32 %s55_s6, %s54_s10 }
  0x1d   : > { %p59_p11 = scmp.eq.s32.totalorder %s56_s11, 0  ;;  %p894_p13 = scmp.lt.s32.totalorder %s1212_s25, 8 }
  0x1e   : > { %p1327_p12 = por %p194_p10, %p74_p5  ;;  %s1333_s13 = sand.u32 1, %s1192_s20  }
  0x1f   : > { %s1336_s14 = scalar_select %p59_p11, %s1192_s20, %s61_s30  }
  0x20   : > { %s1557_s12 = scalar_select %p1327_p12, 1, 0 }
  0x21   : > { %1559 = sst [smem:[#allocation25_spill]] %s1336_s14  ;;  %s1339_s15 = sshll.u32 %s1333_s13, 3 }
  0x22   : > { %1558 = sst [smem:[#allocation24_spill]] %s1557_s12  ;;  %s819_s16 = sshll.u32 %s1208_s24, 2 }
  0x23   : > { %s254_s17 = sadd.s32 %s1204_s23, %s819_s16  ;;  %p1345_p0 = pnand %p894_p13, %p1307_p3 }
  0x24   : > { %s1349_s6 = sshll.u32 %s254_s17, 7  ;;  %s265_s10 = sand.u32 1, %s1212_s25  }
  0x25   : > { %s1561_s1 = sld [smem:[#allocation26_spill]]  ;;  %s269_s28 = scalar_lea.vmem [#allocation5], %s1339_s15 }
  0x26   : > { %s278_s14 = sshll.u32 %s269_s28, 4  ;;  %p830_p1 = scmp.ge.s32.totalorder %s1212_s25, 1  ;;  %s279_s14 = int_to_ptr.vmem [resolvable:$true] %s278_s14 }
  0x27   : > { %p324_p2 = scmp.lt.s32.totalorder %s1212_s25, 9  ;;  %s1359_s7 = scalar_lea.sflag [#allocation6], %s265_s10 }
  0x28   : > { %p968_p3 = pneg %p1345_p0  ;;  %s979_s16 = scalar_lea.vmem %s279_s14, 128 }
  0x29   : > { %p980_p4 = scmp.ne.s32.totalorder %s279_s14, %s979_s16  ;;  %s1214_s17 = smov [#allocation5]  }
  0x2a   : > { %s984_s24 = sshll.u32 %s1214_s17, 4  ;;  %s985_s24 = int_to_ptr.vmem [resolvable:$false] %s984_s24 }
  0x2b   : > { %s276_s30 = scalar_lea.hbm %s1561_s1, %s1349_s6  ;;  %p982_p5 = pnand %p980_p4, %p968_p3 }
  0x2c   : > { %s986_s29 = scalar_lea.vmem %s985_s24, 256  ;;  %p987_p7 = scmp.lt.s32.totalorder %s279_s14, %s985_s24 }
  0x2d   : > { %p983_p6 = pneg %p982_p5  ;;  %p988_p10 = scmp.lt.s32.totalorder %s986_s29, %s979_s16 }
  0x2f   : > { %p989_p11 = por %p988_p10, %p987_p7 }
  0x31   : > { %p990_p13 = pnand %p989_p11, %p983_p6 }
  0x33   : > { %993 = shalt.err (!%p990_p13)
}
  0x34   : > { %880 = dma.hbm_to_vmem [thread:$0]  (!%p1345_p0), %s276_s30, 128, %s279_s14, %s1359_s7  }
  0x35   : > { %p1373_p4 = pnand %p830_p1, %p324_p2  ;;  %s256_s11 = scalar_lea.hbm %s1534_s0, %s1349_s6 }
  0x36   : > { %s248_s16 = scalar_lea.vmem [#allocation2], %s1339_s15  ;;  %s296_s23 = scalar_lea.hbm %s1536_s2, %s1349_s6 }
  0x37   : > { %s258_s17 = sshll.u32 %s248_s16, 4  ;;  %s245_s20 = scalar_lea.sflag [#allocation3], %s1333_s13  ;;  %s259_s17 = int_to_ptr.vmem [resolvable:$true] %s258_s17 }
  0x38   : > { %s1007_s12 = scalar_lea.vmem %s259_s17, 128  ;;  %s1215_s14 = smov [#allocation2]  }
  0x39   : > { %p1008_p5 = scmp.ne.s32.totalorder %s259_s17, %s1007_s12  ;;  %s1012_s30 = sshll.u32 %s1215_s14, 4  ;;  %s1013_s30 = int_to_ptr.vmem [resolvable:$false] %s1012_s30 }
  0x3a   : > { %s1014_s18 = scalar_lea.vmem %s1013_s30, 256  ;;  %p1015_p6 = scmp.lt.s32.totalorder %s259_s17, %s1013_s30 }
  0x3b   : > { %p1010_p1 = pnand %p1008_p5, %p968_p3  ;;  %p1016_p7 = scmp.lt.s32.totalorder %s1014_s18, %s1007_s12 }
  0x3d   : > { %p1011_p2 = pneg %p1010_p1  ;;  %p1017_p10 = por %p1016_p7, %p1015_p6 }
  0x3f   : > { %p1018_p11 = pnand %p1017_p10, %p1011_p2 }
  0x41   : > { %1021 = shalt.err (!%p1018_p11)
}
  0x42   : > { %877 = dma.hbm_to_vmem [thread:$0]  (!%p1345_p0), %s256_s11, 128, %s259_s17, %s245_s20  }
  0x43   : > { %s289_s1 = scalar_lea.vmem [#allocation7], %s1339_s15  ;;  %s1216_s16 = smov [#allocation7]  }
  0x44   : > { %s298_s24 = sshll.u32 %s289_s1, 4  ;;  %s1040_s29 = sshll.u32 %s1216_s16, 4  ;;  %s299_s24 = int_to_ptr.vmem [resolvable:$true] %s298_s24  ;;  %s1041_s29 = int_to_ptr.vmem [resolvable:$false] %s1040_s29 }
  0x45   : > { %s1035_s10 = scalar_lea.vmem %s299_s24, 128  ;;  %s1042_s18 = scalar_lea.vmem %s1041_s29, 256 }
  0x46   : > { %p1036_p13 = scmp.ne.s32.totalorder %s299_s24, %s1035_s10  ;;  %p1043_p2 = scmp.lt.s32.totalorder %s299_s24, %s1041_s29 }
  0x47   : > { %p1044_p6 = scmp.lt.s32.totalorder %s1042_s18, %s1035_s10 }
  0x48   : > { %p1038_p5 = pnand %p1036_p13, %p968_p3 }
  0x49   : > { %p1045_p7 = por %p1044_p6, %p1043_p2 }
  0x4a   : > { %p1039_p1 = pneg %p1038_p5 }
  0x4c   : > { %p1046_p10 = pnand %p1045_p7, %p1039_p1 }
  0x4e   : > { %1049 = shalt.err (!%p1046_p10)
}
  0x4f   : > { %883 = dma.hbm_to_vmem [thread:$0]  (!%p1345_p0), %s296_s23, 128, %s299_s24, %s1359_s7  }
  0x50   : > { %s317_s14 = scalar_lea.hbm %s1537_s3, %s1349_s6  ;;  %s309_s30 = scalar_lea.vmem [#allocation8], %s1339_s15 }
  0x51   : > { %s319_s1 = sshll.u32 %s309_s30, 4  ;;  %s306_s10 = scalar_lea.sflag [#allocation9], %s1333_s13  ;;  %s320_s1 = int_to_ptr.vmem [resolvable:$true] %s319_s1 }
  0x52   : > { %s1063_s16 = scalar_lea.vmem %s320_s1, 128  ;;  %s1217_s29 = smov [#allocation8]  }
  0x53   : > { %p1064_p11 = scmp.ne.s32.totalorder %s320_s1, %s1063_s16  ;;  %s1068_s18 = sshll.u32 %s1217_s29, 4  ;;  %s1069_s18 = int_to_ptr.vmem [resolvable:$false] %s1068_s18 }
  0x54   : > { %s1070_s20 = scalar_lea.vmem %s1069_s18, 256  ;;  %p1071_p1 = scmp.lt.s32.totalorder %s320_s1, %s1069_s18 }
  0x55   : > { %p1066_p13 = pnand %p1064_p11, %p968_p3  ;;  %p1072_p2 = scmp.lt.s32.totalorder %s1070_s20, %s1063_s16 }
  0x57   : > { %p1067_p5 = pneg %p1066_p13  ;;  %p1073_p6 = por %p1072_p2, %p1071_p1 }
  0x59   : > { %p1074_p7 = pnand %p1073_p6, %p1067_p5 }
  0x5b   : > { %1077 = shalt.err (!%p1074_p7)
}
  0x5c   : > { %886 = dma.hbm_to_vmem [thread:$0]  (!%p1345_p0), %s317_s14, 128, %s320_s1, %s306_s10  }
  0x5d   : > { %328 = sbr.rel (%p1373_p4) target bundleno = 825 (0x339), region = 36  ;;  %s1418_s23 = sand.u32 (!%p1373_p4), 1, %s1188_s19  }
  0x5e   : > { %s1421_s13 = sshll.u32 (!%p1373_p4), %s1418_s23, 3  ;;  %s331_s15 = scalar_lea.sflag (!%p1373_p4), [#allocation3], %s1418_s23 }
  0x5f   : > { %s334_s6 = scalar_lea.vmem (!%p1373_p4), [#allocation2], %s1421_s13 }
  0x62   : > { %1163 = dma.done.wait (%p1317_p8), %s331_s15, 128  }
  0x63   : > { %1165 = vsyncadd (%p1317_p8), %s331_s15, 4294967168  ;;  %s339_s27 = sand.u32 1, %s1293_s26   ;;  %s343_s28 = scalar_lea.vmem [#allocation5], %s1421_s13 }
  0x64   : > { %s340_s7 = scalar_lea.sflag [#allocation6], %s339_s27 }
  0x65   : > { %1167 = dma.done.wait (%p1317_p8), %s340_s7, 256  }
  0x66   : > { %1169 = vsyncadd (%p1317_p8), %s340_s7, 4294967040  ;;  %s352_s24 = scalar_lea.vmem [#allocation7], %s1421_s13  ;;  %s358_s12 = scalar_lea.sflag [#allocation9], %s1418_s23 }
  0x67   : > { %s361_s11 = scalar_lea.vmem [#allocation8], %s1421_s13 }
  0x68   : > { %1171 = dma.done.wait (%p1317_p8), %s358_s12, 128  }
  0x69   : > { %1173 = vsyncadd (%p1317_p8), %s358_s12, 4294967168  ;;  %v1218_v0 = vmov 0.0   ;;  %vm1219_vm0 = vmmov 0   ;;  %vm413_vm1 = vcmask 261120   ;;  %v410_v1 = vld [vmem:[%s343_s28] sm:$0xff]  ;;  %v408_v2 = vld [vmem:[%s334_s6] sm:$0xff] }
  0x6a   : > { %852 = vmatprep.subr.mxu0 %v1218_v0  ;;  %854 = vmatprep.mubr.msk.f32.mxu0 %vm1219_vm0, %v1218_v0  ;;  %v409_v3 = vmul.f32 0.17677669, %v408_v2  ;;  %v412_v4 = vld [vmem:[%s361_s11] sm:$0xff]  ;;  %vm490_vm2 = vcmask 64512   ;;  %v411_v14 = vld [vmem:[%s352_s24] sm:$0xff]  ;;  %s407_s26 = scalar_lea.vmem [#allocation11], %s1421_s13 }
  0x6b   : > { %857 = vmatprep.subr.mxu1 %v1218_v0  ;;  %859 = vmatprep.mubr.msk.f32.mxu1 %vm1219_vm0, %v1218_v0  ;;  %s842_s8 = sshll.u32 %s1200_s22, 2  ;;  %s616_s16 = sshll.u32 %s407_s26, 4  ;;  %s617_s16 = int_to_ptr.vmem [resolvable:$true] %s616_s16 }
  0x6c   : > { %853 = vmatpush3.xpose.msk.msra.mxu0 %vm413_vm1, %v410_v1  ;;  %858 = vmatpush3.msra.mxu1 %v411_v14  ;;  %s1453_s17 = sadd.s32 %s1196_s21, %s842_s8  ;;  %s584_s29 = scalar_lea.sflag [#allocation12], %s1418_s23 }
  0x6d   : > { %s843_s14 = sshll.u32 %s1453_s17, 7  ;;  %s1078_s18 = scalar_lea.vmem %s617_s16, 128 }
  0x6e   : > { %s614_s10 = scalar_lea.hbm %s1539_s5, %s843_s14  ;;  %p1079_p8 = scmp.ne.s32.totalorder %s617_s16, %s1078_s18 }
  0x6f   : > { %855 = vmatmul.mubr.msk.f32.vlgmr.msra.gmra.mxu0 %vm413_vm1, %v409_v3  ;;  %s1220_s20 = smov [#allocation11]  }
  0x70   : > { %p1080_p0 = pnand %p1079_p8, %p1321_p9  ;;  %s1082_s22 = sshll.u32 %s1220_s20, 4  ;;  %s1083_s22 = int_to_ptr.vmem [resolvable:$false] %s1082_s22 }
  0x71   : > { %s1084_s21 = scalar_lea.vmem %s1083_s22, 256  ;;  %p1085_p4 = scmp.lt.s32.totalorder %s617_s16, %s1083_s22 }
  0x72   : > { %p1081_p3 = pneg %p1080_p0  ;;  %p1086_p10 = scmp.lt.s32.totalorder %s1084_s21, %s1078_s18 }
  0x74   : > { %p1087_p11 = por %p1086_p10, %p1085_p4 }
  0x76   : > { %p1088_p13 = pnand %p1087_p11, %p1081_p3 }
 0x12f   : > { %v486_v5 = vpop.f32.mrf.mxu0 }
 0x130   : > { %v487_v6 = vadd.f32 %v486_v5, %v412_v4 }
 0x131   : > { %v856_v7 = vpop.f32.mrf.mxu0 }
 0x132   : > { %v491_v8 = vsel %vm490_vm2, %v487_v6, -inf }
 0x133   : > { %492 = vmax.xlane.f32.xlu0 %v491_v8 }
 0x1bc   : > { %v493_v9 = vpop.xlane.xlu0 %492 }
 0x1bd   : > { %v494_v10 = vsub.f32 %v487_v6, %v493_v9 }
 0x1bf   : > { %v495_v11 = vmul.f32 1.442695, %v494_v10 }
 0x1c1   : > { %962 = vpow2.f32 %v495_v11 }
 0x1ce   : > { %v963_v12 = vpop.eup %962 }
 0x1cf   : > { %v497_v13 = vsel %vm490_vm2, %v963_v12, 0.0 }
 0x1d0   : > { %498 = vadd.xlane.f32.xlu0 %v497_v13 }
 0x259   : > { %v499_v15 = vpop.xlane.xlu0 %498 }
 0x25a   : > { %964 = vrcp.f32 %v499_v15 }
 0x267   : > { %v965_v16 = vpop.eup %964 }
 0x268   : > { %v502_v17 = vmul.f32 %v965_v16, %v963_v12 }
 0x26a   : > { %860 = vmatmul.mubr.msk.f32.vlgmr.msra.gmra.mxu1 %vm490_vm2, %v502_v17  ;;  %577 = vst.msk [vmem:[%s407_s26] sm:$0xff] %vm490_vm2, %v502_v17 }
 0x26b   : > { %1091 = shalt.err (!%p1088_p13)
}
 0x26c   : > { %s1092_s15 = scalar_lea.hbm %s614_s10, 128  ;;  %s1096_s7 = scalar_lea.hbm %s1539_s5, 1024 }
 0x26d   : > { %p1093_p5 = scmp.ne.s32.totalorder %s614_s10, %s1092_s15  ;;  %p1097_p6 = scmp.lt.s32.totalorder %s614_s10, %s1539_s5 }
 0x26e   : > { %p1098_p7 = scmp.lt.s32.totalorder %s1096_s7, %s1092_s15 }
 0x26f   : > { %p1094_p1 = pnand %p1093_p5, %p1321_p9 }
 0x270   : > { %p1099_p8 = por %p1098_p7, %p1097_p6 }
 0x271   : > { %p1095_p2 = pneg %p1094_p1 }
 0x273   : > { %p1100_p0 = pnand %p1099_p8, %p1095_p2 }
 0x275   : > { %1103 = shalt.err (!%p1100_p0)
}
 0x276   : > { %871 = dma.vmem_to_hbm [thread:$0]  (%p1321_p9), %s617_s16, 128, %s614_s10, %s584_s29  }
 0x277   : > { %s400_s12 = scalar_lea.vmem [#allocation10], %s1421_s13  ;;  %s1480_s30 = scalar_lea.hbm %s1538_s4, %s843_s14 }
 0x278   : > { %s600_s11 = sshll.u32 %s400_s12, 4  ;;  %s579_s1 = scalar_lea.sflag [#allocation4], %s1418_s23  ;;  %s1482_s11 = int_to_ptr.vmem [resolvable:$true] %s600_s11 }
 0x279   : > { %s1104_s18 = scalar_lea.vmem %s1482_s11, 128  ;;  %s1221_s13 = smov [#allocation10]  }
 0x27a   : > { %p1105_p3 = scmp.ne.s32.totalorder %s1482_s11, %s1104_s18  ;;  %s1108_s17 = sshll.u32 %s1221_s13, 4  ;;  %s1109_s17 = int_to_ptr.vmem [resolvable:$false] %s1108_s17 }
 0x27b   : > { %s1110_s14 = scalar_lea.vmem %s1109_s17, 256  ;;  %p1111_p11 = scmp.lt.s32.totalorder %s1482_s11, %s1109_s17 }
 0x27c   : > { %p1106_p4 = pnand %p1105_p3, %p1321_p9  ;;  %p1112_p13 = scmp.lt.s32.totalorder %s1110_s14, %s1104_s18 }
 0x27e   : > { %p1107_p10 = pneg %p1106_p4  ;;  %p1113_p5 = por %p1112_p13, %p1111_p11 }
 0x280   : > { %p1114_p1 = pnand %p1113_p5, %p1107_p10 }
 0x32a   : > { %v572_v18 = vpop.f32.mrf.mxu1 }
 0x32b   : > { %576 = vst.msk [vmem:[%s400_s12] sm:$0xff] %vm413_vm1, %v572_v18 }
 0x32c   : > { %v861_v19 = vpop.f32.mrf.mxu1 }
 0x32d   : > { %1117 = shalt.err (!%p1114_p1)
}
 0x32e   : > { %s1118_s10 = scalar_lea.hbm %s1480_s30, 128  ;;  %s1122_s29 = scalar_lea.hbm %s1538_s4, 1024 }
 0x32f   : > { %p1119_p2 = scmp.ne.s32.totalorder %s1480_s30, %s1118_s10  ;;  %p1123_p8 = scmp.lt.s32.totalorder %s1480_s30, %s1538_s4 }
 0x330   : > { %p1124_p0 = scmp.lt.s32.totalorder %s1122_s29, %s1118_s10 }
 0x331   : > { %p1120_p6 = pnand %p1119_p2, %p1321_p9 }
 0x332   : > { %p1125_p3 = por %p1124_p0, %p1123_p8 }
 0x333   : > { %p1121_p7 = pneg %p1120_p6 }
 0x335   : > { %p1126_p4 = pnand %p1125_p3, %p1121_p7 }
 0x337   : > { %1129 = shalt.err (!%p1126_p4)
}
 0x338   : > { %870 = dma.vmem_to_hbm [thread:$0]  (%p1321_p9), %s1482_s11, 128, %s1480_s30, %s579_s1  }
 0x339 PF: > { %s1563_s21 = sld [smem:[#allocation18_spill]]  ;;  %p895_p10 = scmp.ge.s32.totalorder %s1212_s25, 2 }
 0x33b   : > { %p888_p11 = pnand %p895_p10, %p1327_p12 }
 0x33d   : > { %p889_p13 = pneg %p888_p11 }
 0x33f   : > { %s628_s6 = sand.u32 1, %s1563_s21  }
 0x340   : > { %s629_s27 = scalar_lea.sflag [#allocation4], %s628_s6 }
 0x341   : > { %1175 = dma.done.wait (%p889_p13), %s629_s27, 128  }
 0x342   : > { %1177 = vsyncadd (%p889_p13), %s629_s27, 4294967168  ;;  %s638_s7 = scalar_lea.sflag [#allocation12], %s628_s6 }
 0x343   : > { %1179 = dma.done.wait (%p889_p13), %s638_s7, 128  }
 0x344   : > { %1181 = vsyncadd (%p889_p13), %s638_s7, 4294967168  ;;  %s31_s25 = sadd.s32 1, %s1212_s25   ;;  %s1565_s9 = sld [smem:[#allocation19_spill]] }
 0x345   : > { %p28_p5 = scmp.ge.s32.totalorder %s31_s25, 10   ;;  %s1566_s20 = sld [smem:[#allocation25_spill]] }
 0x346   : > { %s1567_s21 = sld [smem:[#allocation20_spill]]  ;;  %s1571_s18 = smov %s1188_s19 }
 0x347   : > { %s1568_s22 = sld [smem:[#allocation21_spill]]  ;;  %30 = sbr.rel (!%p28_p5) target bundleno = 15 (0xf), region = 135 }
 0x348   : > { %s1569_s23 = sld [smem:[#allocation22_spill]] }
 0x349   : > { %s1570_s24 = sld [smem:[#allocation23_spill]] }
 0x34a   : > { %s1572_s19 = smov %s1565_s9 }
 0x34c   :  { %643 = vsyncpa [#allocation3], 1 }
 0x34d   :  { %645 = vsyncpa [#allocation3 + $0x1], 1 }
 0x34e   :  { %646 = vsyncpa [#allocation6], 1 }
 0x34f   :  { %648 = vsyncpa [#allocation6 + $0x1], 1 }
 0x350   :  { %649 = vsyncpa [#allocation9], 1 }
 0x351   :  { %651 = vsyncpa [#allocation9 + $0x1], 1 }
 0x352   :  { %652 = vsyncpa [#allocation4], 1 }
 0x353   :  { %654 = vsyncpa [#allocation4 + $0x1], 1 }
 0x354   :  { %655 = vsyncpa [#allocation12], 1 }
 0x355   :  { %657 = vsyncpa [#allocation12 + $0x1], 1 }

</bundles_post_ra>
